<compile_context>
chip_gen: v7x
topology: tpu7x:2x2x1
jax: 0.10.0
libtpu: 0.0.40
codegen_flags: <defaults>
</compile_context>

<pallas_src>
import jax
import jax.numpy as jnp
from jax import lax
from jax.experimental import pallas as pl
from jax.experimental.pallas import tpu as pltpu


def _round_up(x, m):
    return ((x + m - 1) // m) * m


# ----------------------------- Pallas kernel -----------------------------

def _convlstm_kernel(p_ref, w_ref, c_ref, h_out_ref, c_out_ref):
    """Fused ConvLSTM cell on one column tile (channel-major layout).

    p_ref : (K_pad, Nt)    bf16  im2col'd [x ; h_prev] patches (+ bias/zero rows)
    w_ref : (4*Chid, K_pad) bf16 stacked conv weights, gates [i,f,c,o], bias folded
    c_ref : (Chid, Nt)     f32   previous cell state
    h_out_ref, c_out_ref : (Chid, Nt) f32
    """
    Chid = c_ref.shape[0]

    # One MXU matmul with f32 accumulation: (4*Chid, K_pad) @ (K_pad, Nt).
    pre = jnp.dot(w_ref[...], p_ref[...], preferred_element_type=jnp.float32)

    def sigmoid(z):                              # one EUP tanh per gate
        return 0.5 * (jnp.tanh(0.5 * z) + 1.0)

    i_gate = sigmoid(pre[0 * Chid:1 * Chid, :])
    f_gate = sigmoid(pre[1 * Chid:2 * Chid, :])
    c_tilde = jnp.tanh(pre[2 * Chid:3 * Chid, :])
    o_gate = sigmoid(pre[3 * Chid:4 * Chid, :])

    c_new = c_tilde * i_gate + c_ref[...] * f_gate
    h_out_ref[...] = o_gate * jnp.tanh(c_new)
    c_out_ref[...] = c_new


# --------------------------- one-time weight prep -------------------------

def prepare_convlstm_weights(w_x, w_h, b_x):
    """Pack conv weights + bias into one (4*Chid, K_pad) bf16 matrix.

    Hoisted out of the per-timestep path: call once, reuse every step.
    w_x: (3,3,Cin,4*Chid) HWIO, gates [i,f,c,o] along last axis
    w_h: (3,3,Chid,4*Chid) HWIO (no bias)
    b_x: (4*Chid,)
    """
    kh, kw, Cin, Cout = w_x.shape
    Chid = w_h.shape[2]
    C = Cin + Chid
    K_conv = kh * kw * C
    K_raw = K_conv + 1                      # +1 row: bias folded into the matmul
    K_pad = _round_up(K_raw, 128)           # clean MXU / (16,128)-tile K

    w_cat = jnp.concatenate([w_x, w_h], axis=2)                 # (3,3,C,4*Chid)
    w_t = jnp.transpose(w_cat, (3, 0, 1, 2)).reshape(Cout, K_conv)
    w_packed = jnp.concatenate(
        [w_t,
         b_x.reshape(Cout, 1).astype(w_t.dtype),                # bias column
         jnp.zeros((Cout, K_pad - K_raw), w_t.dtype)], axis=1)  # zero K padding
    return w_packed.astype(jnp.bfloat16)                        # (4*Chid, K_pad)


def _num_col_tiles(N):
    # v7x has 2 TensorCores per chip: split the merged column axis into 2
    # "parallel" tiles so each TC gets half of N with the weight resident.
    # Single-TC v5e/v6e: one grid step over the full N (no per-step overhead).
    try:
        kind = jax.devices()[0].device_kind.lower()
    except Exception:
        kind = ""
    if "v7" in kind and N % 2 == 0 and (N // 2) % 128 == 0:
        return 2
    return 1


# ----------------------------- cell wrapper -------------------------------

def conv_lstm_cell_pallas(x_nchw, h_nchw, c_nchw, w_packed):
    """Fused ConvLSTM cell forward.

    x_nchw: (B, Cin, H, W)  f32
    h_nchw: (B, Chid, H, W) f32  previous hidden state
    c_nchw: (B, Chid, H, W) f32  previous cell state
    w_packed: (4*Chid, K_pad) bf16 from prepare_convlstm_weights()
    returns (h_new, c_new) in NCHW f32.
    """
    B, Cin, H, W = x_nchw.shape
    Chid = h_nchw.shape[1]
    C = Cin + Chid
    HW = H * W
    N = B * HW
    Cout, K_pad = w_packed.shape
    assert Cout == 4 * Chid
    K_conv = 9 * C

    # ---- per-step activation prep (plain XLA, small at these shapes) ------
    # Channel-major layout with batch merged into the column axis:
    # column n = b*H*W + y*W + x ; row k = (dy*3+dx)*C + c ; row K_conv = bias 1s.
    xh = jnp.concatenate([x_nchw, h_nchw], axis=1).astype(jnp.bfloat16)  # (B,C,H,W)
    xh = jnp.transpose(xh, (1, 0, 2, 3))                                 # (C,B,H,W)
    xh_pad = jnp.pad(xh, ((0, 0), (0, 0), (1, 1), (1, 1)))               # (C,B,H+2,W+2)
    taps = [xh_pad[:, :, dy:dy + H, dx:dx + W].reshape(C, N)
            for dy in range(3) for dx in range(3)]
    patches = jnp.concatenate(
        taps
        + [jnp.ones((1, N), jnp.bfloat16),                    # bias row
           jnp.zeros((K_pad - K_conv - 1, N), jnp.bfloat16)], # K padding
        axis=0)                                               # (K_pad, N)

    c_cm = jnp.transpose(c_nchw.reshape(B, Chid, HW), (1, 0, 2))
    c_cm = c_cm.reshape(Chid, N).astype(jnp.float32)          # (Chid, N)

    n_tiles = _num_col_tiles(N)
    Nt = N // n_tiles

    grid_spec = pltpu.PrefetchScalarGridSpec(
        num_scalar_prefetch=0,
        grid=(n_tiles,),
        in_specs=[
            pl.BlockSpec((K_pad, Nt), lambda t: (0, t)),      # patches column tile
            pl.BlockSpec((Cout, K_pad), lambda t: (0, 0)),    # weight: resident
            pl.BlockSpec((Chid, Nt), lambda t: (0, t)),       # cell state tile
        ],
        out_specs=[
            pl.BlockSpec((Chid, Nt), lambda t: (0, t)),
            pl.BlockSpec((Chid, Nt), lambda t: (0, t)),
        ],
    )

    h_cm, c_new_cm = pl.pallas_call(
        _convlstm_kernel,
        out_shape=(jax.ShapeDtypeStruct((Chid, N), jnp.float32),
                   jax.ShapeDtypeStruct((Chid, N), jnp.float32)),
        grid_spec=grid_spec,
        compiler_params=pltpu.CompilerParams(
            dimension_semantics=("parallel",)),
    )(patches, w_packed, c_cm)

    # Back to NCHW for the caller.
    h_new = jnp.transpose(h_cm.reshape(Chid, B, H, W), (1, 0, 2, 3))
    c_new = jnp.transpose(c_new_cm.reshape(Chid, B, H, W), (1, 0, 2, 3))
    return h_new, c_new


# ---------------- deterministic parameter construction -----------------

def xavier_normal_conv(key, kh, kw, cin, cout):
    # matches torch.nn.init.xavier_normal_ for a Conv2d weight (out,in,kh,kw)
    fan_in = cin * kh * kw
    fan_out = cout * kh * kw
    std = (2.0 / (fan_in + fan_out)) ** 0.5
    # produced directly in HWIO (kh, kw, cin, cout) layout
    return std * jax.random.normal(key, (kh, kw, cin, cout), jnp.float32)


def make_params(key, input_size, hidden_size):
    ks = jax.random.split(key, 8)
    # gate order: i, f, c, o
    wx = jnp.concatenate(
        [xavier_normal_conv(ks[g], 3, 3, input_size, hidden_size)
         for g in range(4)], axis=-1)                       # (3,3,Cin,4*Chid)
    wh = jnp.concatenate(
        [xavier_normal_conv(ks[4 + g], 3, 3, hidden_size, hidden_size)
         for g in range(4)], axis=-1)                       # (3,3,Chid,4*Chid)
    bx = jnp.zeros((4 * hidden_size,), jnp.float32)          # bias init = 0
    return wx, wh, bx


# ---------------- pure-JAX reference for verification -----------------

def conv_lstm_cell_ref(x, h, c, w_x, w_h, b_x):
    Chid = h.shape[1]
    dn = lax.conv_dimension_numbers(x.shape, w_x.shape, ("NCHW", "HWIO", "NCHW"))
    pre = (lax.conv_general_dilated(x, w_x, (1, 1), ((1, 1), (1, 1)),
                                    dimension_numbers=dn)
           + lax.conv_general_dilated(h, w_h, (1, 1), ((1, 1), (1, 1)),
                                      dimension_numbers=dn)
           + b_x[None, :, None, None])
    i = jax.nn.sigmoid(pre[:, 0 * Chid:1 * Chid])
    f = jax.nn.sigmoid(pre[:, 1 * Chid:2 * Chid])
    ct = jnp.tanh(pre[:, 2 * Chid:3 * Chid])
    o = jax.nn.sigmoid(pre[:, 3 * Chid:4 * Chid])
    c_new = ct * i + c * f
    h_new = o * jnp.tanh(c_new)
    return h_new, c_new


if __name__ == "__main__":
    B, Cin, H, W = 2, 4, 16, 16
    Chid = 32

    key = jax.random.PRNGKey(0)
    kp, kx, kh, kc = jax.random.split(key, 4)

    w_x, w_h, b_x = make_params(kp, Cin, Chid)

    x = jax.random.normal(kx, (B, Cin, H, W), jnp.float32)      # NCHW input
    h_prev = jax.random.normal(kh, (B, Chid, H, W), jnp.float32)
    c_prev = jax.random.normal(kc, (B, Chid, H, W), jnp.float32)

    # One-time weight packing (hoisted out of the per-timestep path).
    w_packed = jax.block_until_ready(prepare_convlstm_weights(w_x, w_h, b_x))

    cell = jax.jit(conv_lstm_cell_pallas)
    h_new, c_new = cell(x, h_prev, c_prev, w_packed)
    h_new = jax.block_until_ready(h_new)
    c_new = jax.block_until_ready(c_new)

    h_ref, c_ref = conv_lstm_cell_ref(x, h_prev, c_prev, w_x, w_h, b_x)
    # bf16 matmul operands (f32 accumulate) vs. the f32 reference -> looser tol.
    assert jnp.allclose(h_new, h_ref, rtol=4e-2, atol=4e-2)
    assert jnp.allclose(c_new, c_ref, rtol=4e-2, atol=4e-2)

    print("KERNEL_OK")
</pallas_src>

<mosaic_0001>
module attributes {stable_mosaic.version = 11 : i64} {
  func.func @_convlstm_kernel(%arg0: i32, %arg1: memref<384x512xbf16, #tpu.memory_space<vmem>>, %arg2: memref<128x384xbf16, #tpu.memory_space<vmem>>, %arg3: memref<32x512xf32, #tpu.memory_space<vmem>>, %arg4: memref<32x512xf32, #tpu.memory_space<vmem>>, %arg5: memref<32x512xf32, #tpu.memory_space<vmem>>) attributes {dimension_semantics = [#tpu.dimension_semantics<parallel>], iteration_bounds = array<i64: 1>, scalar_prefetch = 0 : i64, scratch_operands = 0 : i64, tpu.core_type = #tpu.core_type<tc>, window_params = [{transform_indices = @transform_0, window_bounds = array<i64: 384, 512>}, {pipeline_mode = #tpu.pipeline_mode<synchronous>, transform_indices = @transform_1, window_bounds = array<i64: 128, 384>}, {transform_indices = @transform_2, window_bounds = array<i64: 32, 512>}, {transform_indices = @transform_3, window_bounds = array<i64: 32, 512>}, {transform_indices = @transform_4, window_bounds = array<i64: 32, 512>}]} {
    %c0 = arith.constant 0 : index
    %c0_0 = arith.constant 0 : index
    %0 = vector.load %arg2[%c0, %c0_0] : memref<128x384xbf16, #tpu.memory_space<vmem>>, vector<128x384xbf16>
    %c0_1 = arith.constant 0 : index
    %c0_2 = arith.constant 0 : index
    %1 = vector.load %arg1[%c0_1, %c0_2] : memref<384x512xbf16, #tpu.memory_space<vmem>>, vector<384x512xbf16>
    %cst = arith.constant dense<0.000000e+00> : vector<128x512xf32>
    %2 = tpu.matmul %0, %1, %cst {dimension_numbers = #tpu.dot_dimension_numbers<[1], [0], [0], [1], [0, 0, 1, 1], [], []>} : vector<128x384xbf16>, vector<384x512xbf16>, vector<128x512xf32> -> vector<128x512xf32>
    %3 = vector.extract_strided_slice %2 {offsets = [0, 0], sizes = [32, 512], strides = [1, 1]} : vector<128x512xf32> to vector<32x512xf32>
    %cst_3 = arith.constant 5.000000e-01 : f32
    %4 = vector.broadcast %cst_3 : f32 to vector<32x512xf32>
    %5 = arith.mulf %4, %3 : vector<32x512xf32>
    %6 = math.tanh %5 : vector<32x512xf32>
    %cst_4 = arith.constant 1.000000e+00 : f32
    %7 = vector.broadcast %cst_4 : f32 to vector<32x512xf32>
    %8 = arith.addf %6, %7 : vector<32x512xf32>
    %cst_5 = arith.constant 5.000000e-01 : f32
    %9 = vector.broadcast %cst_5 : f32 to vector<32x512xf32>
    %10 = arith.mulf %9, %8 : vector<32x512xf32>
    %11 = vector.extract_strided_slice %2 {offsets = [32, 0], sizes = [32, 512], strides = [1, 1]} : vector<128x512xf32> to vector<32x512xf32>
    %cst_6 = arith.constant 5.000000e-01 : f32
    %12 = vector.broadcast %cst_6 : f32 to vector<32x512xf32>
    %13 = arith.mulf %12, %11 : vector<32x512xf32>
    %14 = math.tanh %13 : vector<32x512xf32>
    %cst_7 = arith.constant 1.000000e+00 : f32
    %15 = vector.broadcast %cst_7 : f32 to vector<32x512xf32>
    %16 = arith.addf %14, %15 : vector<32x512xf32>
    %cst_8 = arith.constant 5.000000e-01 : f32
    %17 = vector.broadcast %cst_8 : f32 to vector<32x512xf32>
    %18 = arith.mulf %17, %16 : vector<32x512xf32>
    %19 = vector.extract_strided_slice %2 {offsets = [64, 0], sizes = [32, 512], strides = [1, 1]} : vector<128x512xf32> to vector<32x512xf32>
    %20 = math.tanh %19 : vector<32x512xf32>
    %21 = vector.extract_strided_slice %2 {offsets = [96, 0], sizes = [32, 512], strides = [1, 1]} : vector<128x512xf32> to vector<32x512xf32>
    %cst_9 = arith.constant 5.000000e-01 : f32
    %22 = vector.broadcast %cst_9 : f32 to vector<32x512xf32>
    %23 = arith.mulf %22, %21 : vector<32x512xf32>
    %24 = math.tanh %23 : vector<32x512xf32>
    %cst_10 = arith.constant 1.000000e+00 : f32
    %25 = vector.broadcast %cst_10 : f32 to vector<32x512xf32>
    %26 = arith.addf %24, %25 : vector<32x512xf32>
    %cst_11 = arith.constant 5.000000e-01 : f32
    %27 = vector.broadcast %cst_11 : f32 to vector<32x512xf32>
    %28 = arith.mulf %27, %26 : vector<32x512xf32>
    %29 = arith.mulf %20, %10 : vector<32x512xf32>
    %c0_12 = arith.constant 0 : index
    %c0_13 = arith.constant 0 : index
    %30 = vector.load %arg3[%c0_12, %c0_13] : memref<32x512xf32, #tpu.memory_space<vmem>>, vector<32x512xf32>
    %31 = arith.mulf %30, %18 : vector<32x512xf32>
    %32 = arith.addf %29, %31 : vector<32x512xf32>
    %33 = math.tanh %32 : vector<32x512xf32>
    %34 = arith.mulf %28, %33 : vector<32x512xf32>
    %c0_14 = arith.constant 0 : index
    %c0_15 = arith.constant 0 : index
    %35 = vector.load %arg4[%c0_14, %c0_15] : memref<32x512xf32, #tpu.memory_space<vmem>>, vector<32x512xf32>
    tpu.vector_store %arg4[%c0_14, %c0_15], %34 {strides = array<i32>} : memref<32x512xf32, #tpu.memory_space<vmem>>, vector<32x512xf32>,
    %c0_16 = arith.constant 0 : index
    %c0_17 = arith.constant 0 : index
    %36 = vector.load %arg5[%c0_16, %c0_17] : memref<32x512xf32, #tpu.memory_space<vmem>>, vector<32x512xf32>
    tpu.vector_store %arg5[%c0_16, %c0_17], %32 {strides = array<i32>} : memref<32x512xf32, #tpu.memory_space<vmem>>, vector<32x512xf32>,
    return
  }
  func.func @transform_0(%arg0: i32) -> (i32, i32) {
    %c0_i32 = arith.constant 0 : i32
    %c0_i32_0 = arith.constant 0 : i32
    return %c0_i32, %arg0 : i32, i32
  }
  func.func @transform_1(%arg0: i32) -> (i32, i32) {
    %c0_i32 = arith.constant 0 : i32
    %c0_i32_0 = arith.constant 0 : i32
    %c0_i32_1 = arith.constant 0 : i32
    return %c0_i32, %c0_i32_0 : i32, i32
  }
  func.func @transform_2(%arg0: i32) -> (i32, i32) {
    %c0_i32 = arith.constant 0 : i32
    %c0_i32_0 = arith.constant 0 : i32
    return %c0_i32, %arg0 : i32, i32
  }
  func.func @transform_3(%arg0: i32) -> (i32, i32) {
    %c0_i32 = arith.constant 0 : i32
    %c0_i32_0 = arith.constant 0 : i32
    return %c0_i32, %arg0 : i32, i32
  }
  func.func @transform_4(%arg0: i32) -> (i32, i32) {
    %c0_i32 = arith.constant 0 : i32
    %c0_i32_0 = arith.constant 0 : i32
    return %c0_i32, %arg0 : i32, i32
  }
}

</mosaic_0001>

<bundles_post_ra>
// kernel: conv_lstm_cell_pallas.1
= control target key start
LH: loop header
LB: loop body
LE: loop exit
PB: predicated region body
PF: predicated region fallthrough
CT: control target
= control target key end

     0   :  { %s2765_s0 = inlined_call_operand.vmem [shape: bf16[384,512], index: 0, kind: input, shape index: {}]   ;;  %s2766_s1 = inlined_call_operand.vmem [shape: bf16[128,384], index: 1, kind: input, shape index: {}]   ;;  %s2767_s2 = inlined_call_operand.vmem [shape: f32[32,512], index: 2, kind: input, shape index: {}]   ;;  %s2768_s4 = inlined_call_operand.vmem [shape: f32[32,512], index: 4, kind: output, shape index: {1}]   ;;  %s2769_s3 = inlined_call_operand.vmem [shape: f32[32,512], index: 3, kind: output, shape index: {0}]  }
   0x1   :  { %v1734_v0 = vld [vmem:[%s2765_s0 + $0x4] ss:$16 sps:$4 sm:$0xff]   ;;  %v1736_v1 = vld [vmem:[%s2765_s0 + $0xc] ss:$16 sps:$4 sm:$0xff]   ;;  %v1738_v2 = vld [vmem:[%s2765_s0] ss:$16 sps:$4 sm:$0xff]  }
   0x2   :  { %753 = vmatprep.subr.bf16.mxu0 %v1734_v0  ;;  %v1739_v3 = vld [vmem:[%s2765_s0 + $0x8] ss:$16 sps:$4 sm:$0xff]   ;;  %979 = vmatprep.subr.bf16.mxu1 %v1736_v1  ;;  %v1740_v4 = vld [vmem:[%s2765_s0 + $0x24] ss:$16 sps:$4 sm:$0xff]   ;;  %v1742_v5 = vld [vmem:[%s2765_s0 + $0x2c] ss:$16 sps:$4 sm:$0xff]  }
   0x3   :  { %754 = vmatpush1.bf16.msra.mxu0 %v1738_v2  ;;  %980 = vmatpush1.bf16.msra.mxu1 %v1739_v3  ;;  %v1744_v6 = vld [vmem:[%s2765_s0 + $0x20] ss:$16 sps:$4 sm:$0xff]   ;;  %v1745_v7 = vld [vmem:[%s2765_s0 + $0x28] ss:$16 sps:$4 sm:$0xff]   ;;  %v1746_v8 = vld [vmem:[%s2765_s0 + $0x44] ss:$16 sps:$4 sm:$0xff]  }
   0x4   :  { %755 = vmatprep.subr.bf16.mxu0 %v1740_v4  ;;  %981 = vmatprep.subr.bf16.mxu1 %v1742_v5  ;;  %v1748_v9 = vld [vmem:[%s2765_s0 + $0x4c] ss:$16 sps:$4 sm:$0xff]   ;;  %v1750_v10 = vld [vmem:[%s2765_s0 + $0x40] ss:$16 sps:$4 sm:$0xff]   ;;  %v1751_v11 = vld [vmem:[%s2765_s0 + $0x48] ss:$16 sps:$4 sm:$0xff]  }
   0x5   :  { %v1752_v12 = vld [vmem:[%s2765_s0 + $0x64] ss:$16 sps:$4 sm:$0xff]   ;;  %v1754_v13 = vld [vmem:[%s2765_s0 + $0x6c] ss:$16 sps:$4 sm:$0xff]   ;;  %v1756_v14 = vld [vmem:[%s2765_s0 + $0x60] ss:$16 sps:$4 sm:$0xff]  }
   0x6   :  { %v1757_v15 = vld [vmem:[%s2765_s0 + $0x68] ss:$16 sps:$4 sm:$0xff]   ;;  %v1758_v16 = vld [vmem:[%s2765_s0 + $0x84] ss:$16 sps:$4 sm:$0xff]   ;;  %v1760_v17 = vld [vmem:[%s2765_s0 + $0x8c] ss:$16 sps:$4 sm:$0xff]  }
   0x7   :  { %756 = vmatpush1.bf16.msra.mxu0 %v1744_v6  ;;  %982 = vmatpush1.bf16.msra.mxu1 %v1745_v7  ;;  %v1762_v18 = vld [vmem:[%s2765_s0 + $0x80] ss:$16 sps:$4 sm:$0xff]   ;;  %v1763_v19 = vld [vmem:[%s2765_s0 + $0x88] ss:$16 sps:$4 sm:$0xff]   ;;  %v1764_v20 = vld [vmem:[%s2765_s0 + $0xa4] ss:$16 sps:$4 sm:$0xff]  }
   0x8   :  { %757 = vmatprep.subr.bf16.mxu0 %v1746_v8  ;;  %983 = vmatprep.subr.bf16.mxu1 %v1748_v9  ;;  %v1766_v21 = vld [vmem:[%s2765_s0 + $0xac] ss:$16 sps:$4 sm:$0xff]   ;;  %v1768_v22 = vld [vmem:[%s2765_s0 + $0xa0] ss:$16 sps:$4 sm:$0xff]   ;;  %v1769_v23 = vld [vmem:[%s2765_s0 + $0xa8] ss:$16 sps:$4 sm:$0xff]  }
   0x9   :  { %v1770_v24 = vld [vmem:[%s2765_s0 + $0xc4] ss:$16 sps:$4 sm:$0xff]   ;;  %v1772_v25 = vld [vmem:[%s2765_s0 + $0xcc] ss:$16 sps:$4 sm:$0xff]   ;;  %v1774_v26 = vld [vmem:[%s2765_s0 + $0xc0] ss:$16 sps:$4 sm:$0xff]  }
   0xa   :  { %v1775_v27 = vld [vmem:[%s2765_s0 + $0xc8] ss:$16 sps:$4 sm:$0xff]   ;;  %v1776_v28 = vld [vmem:[%s2765_s0 + $0xe4] ss:$16 sps:$4 sm:$0xff]   ;;  %v1778_v29 = vld [vmem:[%s2765_s0 + $0xec] ss:$16 sps:$4 sm:$0xff]  }
   0xb   :  { %758 = vmatpush1.bf16.msra.mxu0 %v1750_v10  ;;  %984 = vmatpush1.bf16.msra.mxu1 %v1751_v11  ;;  %v1780_v30 = vld [vmem:[%s2765_s0 + $0xe0] ss:$16 sps:$4 sm:$0xff]   ;;  %v1781_v31 = vld [vmem:[%s2765_s0 + $0xe8] ss:$16 sps:$4 sm:$0xff]   ;;  %v1782_v32 = vld [vmem:[%s2765_s0 + $0x104] ss:$16 sps:$4 sm:$0xff]  }
   0xc   :  { %759 = vmatprep.subr.bf16.mxu0 %v1752_v12  ;;  %985 = vmatprep.subr.bf16.mxu1 %v1754_v13  ;;  %v1784_v33 = vld [vmem:[%s2765_s0 + $0x10c] ss:$16 sps:$4 sm:$0xff]   ;;  %v1786_v34 = vld [vmem:[%s2765_s0 + $0x100] ss:$16 sps:$4 sm:$0xff]   ;;  %v1787_v35 = vld [vmem:[%s2765_s0 + $0x108] ss:$16 sps:$4 sm:$0xff]  }
   0xd   :  { %v1788_v36 = vld [vmem:[%s2765_s0 + $0x124] ss:$16 sps:$4 sm:$0xff]   ;;  %v1790_v37 = vld [vmem:[%s2765_s0 + $0x12c] ss:$16 sps:$4 sm:$0xff]   ;;  %v1792_v38 = vld [vmem:[%s2765_s0 + $0x120] ss:$16 sps:$4 sm:$0xff]  }
   0xe   :  { %v1793_v39 = vld [vmem:[%s2765_s0 + $0x128] ss:$16 sps:$4 sm:$0xff]   ;;  %v1794_v40 = vld [vmem:[%s2765_s0 + $0x144] ss:$16 sps:$4 sm:$0xff]   ;;  %v1796_v41 = vld [vmem:[%s2765_s0 + $0x14c] ss:$16 sps:$4 sm:$0xff]  }
   0xf   :  { %760 = vmatpush1.bf16.msra.mxu0 %v1756_v14  ;;  %986 = vmatpush1.bf16.msra.mxu1 %v1757_v15  ;;  %v1798_v42 = vld [vmem:[%s2765_s0 + $0x140] ss:$16 sps:$4 sm:$0xff]   ;;  %v1799_v43 = vld [vmem:[%s2765_s0 + $0x148] ss:$16 sps:$4 sm:$0xff]   ;;  %v1800_v44 = vld [vmem:[%s2765_s0 + $0x164] ss:$16 sps:$4 sm:$0xff]  }
  0x10   :  { %761 = vmatprep.subr.bf16.mxu0 %v1758_v16  ;;  %987 = vmatprep.subr.bf16.mxu1 %v1760_v17  ;;  %v1802_v45 = vld [vmem:[%s2765_s0 + $0x16c] ss:$16 sps:$4 sm:$0xff]   ;;  %v1804_v46 = vld [vmem:[%s2765_s0 + $0x160] ss:$16 sps:$4 sm:$0xff]   ;;  %v1805_v47 = vld [vmem:[%s2765_s0 + $0x168] ss:$16 sps:$4 sm:$0xff]  }
  0x11   :  { %v1832_v48 = vld [vmem:[%s2766_s1 + $0x4] ss:$12 sps:$4 sm:$0xff]   ;;  %v1808_v50 = vld [vmem:[%s2765_s0 + $0x18c] ss:$16 sps:$4 sm:$0xff]   ;;  %v1811_v52 = vld [vmem:[%s2765_s0 + $0x188] ss:$16 sps:$4 sm:$0xff]  }
  0x12   :  { %v1806_v49 = vld [vmem:[%s2765_s0 + $0x184] ss:$16 sps:$4 sm:$0xff]   ;;  %785 = vmatprep.mubr.bf16.mxu0 %v1832_v48  ;;  %1011 = vmatprep.mubr.bf16.mxu1 %v1832_v48  ;;  %v1810_v51 = vld [vmem:[%s2765_s0 + $0x180] ss:$16 sps:$4 sm:$0xff]   ;;  %v1814_v54 = vld [vmem:[%s2765_s0 + $0x1ac] ss:$16 sps:$4 sm:$0xff]  }
  0x13   :  { %762 = vmatpush1.bf16.msra.mxu0 %v1762_v18  ;;  %988 = vmatpush1.bf16.msra.mxu1 %v1763_v19  ;;  %v1812_v53 = vld [vmem:[%s2765_s0 + $0x1a4] ss:$16 sps:$4 sm:$0xff]   ;;  %v1816_v55 = vld [vmem:[%s2765_s0 + $0x1a0] ss:$16 sps:$4 sm:$0xff]   ;;  %v1817_v56 = vld [vmem:[%s2765_s0 + $0x1a8] ss:$16 sps:$4 sm:$0xff]  }
  0x14   :  { %763 = vmatprep.subr.bf16.mxu0 %v1764_v20  ;;  %989 = vmatprep.subr.bf16.mxu1 %v1766_v21  ;;  %v1818_v57 = vld [vmem:[%s2765_s0 + $0x1c4] ss:$16 sps:$4 sm:$0xff]   ;;  %v1820_v58 = vld [vmem:[%s2765_s0 + $0x1cc] ss:$16 sps:$4 sm:$0xff]   ;;  %v1822_v59 = vld [vmem:[%s2765_s0 + $0x1c0] ss:$16 sps:$4 sm:$0xff]  }
  0x15   :  { %v1823_v60 = vld [vmem:[%s2765_s0 + $0x1c8] ss:$16 sps:$4 sm:$0xff]   ;;  %v1824_v61 = vld [vmem:[%s2765_s0 + $0x1e4] ss:$16 sps:$4 sm:$0xff]   ;;  %v1826_v62 = vld [vmem:[%s2765_s0 + $0x1ec] ss:$16 sps:$4 sm:$0xff]  }
  0x16   :  { %v1828_v63 = vld [vmem:[%s2765_s0 + $0x1e0] ss:$16 sps:$4 sm:$0xff]   ;;  %v1829_v0 = vld [vmem:[%s2765_s0 + $0x1e8] ss:$16 sps:$4 sm:$0xff]   ;;  %v1835_v1 = vld [vmem:[%s2765_s0 + $0x204] ss:$16 sps:$4 sm:$0xff]  }
  0x17   :  { %764 = vmatpush1.bf16.msra.mxu0 %v1768_v22  ;;  %990 = vmatpush1.bf16.msra.mxu1 %v1769_v23  ;;  %v1838_v2 = vld [vmem:[%s2765_s0 + $0x20c] ss:$16 sps:$4 sm:$0xff]   ;;  %v1833_v4 = vld [vmem:[%s2765_s0 + $0x200] ss:$16 sps:$4 sm:$0xff]   ;;  %v1836_v5 = vld [vmem:[%s2765_s0 + $0x208] ss:$16 sps:$4 sm:$0xff]  }
  0x18   :  { %765 = vmatprep.subr.bf16.mxu0 %v1770_v24  ;;  %991 = vmatprep.subr.bf16.mxu1 %v1772_v25  ;;  %v1830_v3 = vld [vmem:[%s2766_s1] ss:$12 sps:$4 sm:$0xff]   ;;  %v1839_v6 = vld [vmem:[%s2766_s1 + $0x1c] ss:$12 sps:$4 sm:$0xff]   ;;  %v1844_v7 = vld [vmem:[%s2765_s0 + $0x224] ss:$16 sps:$4 sm:$0xff]  }
  0x19   :  { %v1847_v8 = vld [vmem:[%s2765_s0 + $0x22c] ss:$16 sps:$4 sm:$0xff]   ;;  %v1842_v9 = vld [vmem:[%s2765_s0 + $0x220] ss:$16 sps:$4 sm:$0xff]   ;;  %v1845_v10 = vld [vmem:[%s2765_s0 + $0x228] ss:$16 sps:$4 sm:$0xff]  }
  0x1a   :  { %v1853_v11 = vld [vmem:[%s2765_s0 + $0x244] ss:$16 sps:$4 sm:$0xff]   ;;  %v1856_v12 = vld [vmem:[%s2765_s0 + $0x24c] ss:$16 sps:$4 sm:$0xff]   ;;  %v1851_v15 = vld [vmem:[%s2765_s0 + $0x240] ss:$16 sps:$4 sm:$0xff]  }
  0x1b   :  { %766 = vmatpush1.bf16.msra.mxu0 %v1774_v26  ;;  %992 = vmatpush1.bf16.msra.mxu1 %v1775_v27  ;;  %v1841_v13 = vld [vmem:[%s2766_s1 + $0x18] ss:$12 sps:$4 sm:$0xff]   ;;  %v1848_v14 = vld [vmem:[%s2766_s1 + $0x34] ss:$12 sps:$4 sm:$0xff]   ;;  %v1865_v18 = vld [vmem:[%s2765_s0 + $0x26c] ss:$16 sps:$4 sm:$0xff]  }
  0x1c   :  { %767 = vmatprep.subr.bf16.mxu0 %v1776_v28  ;;  %993 = vmatprep.subr.bf16.mxu1 %v1778_v29  ;;  %v1854_v16 = vld [vmem:[%s2765_s0 + $0x248] ss:$16 sps:$4 sm:$0xff]   ;;  %v1862_v17 = vld [vmem:[%s2765_s0 + $0x264] ss:$16 sps:$4 sm:$0xff]   ;;  %v1860_v19 = vld [vmem:[%s2765_s0 + $0x260] ss:$16 sps:$4 sm:$0xff]  }
  0x1d   :  { %v1863_v20 = vld [vmem:[%s2765_s0 + $0x268] ss:$16 sps:$4 sm:$0xff]   ;;  %v1850_v21 = vld [vmem:[%s2766_s1 + $0x30] ss:$12 sps:$4 sm:$0xff]   ;;  %v1871_v22 = vld [vmem:[%s2765_s0 + $0x284] ss:$16 sps:$4 sm:$0xff]  }
  0x1e   :  { %v1874_v23 = vld [vmem:[%s2765_s0 + $0x28c] ss:$16 sps:$4 sm:$0xff]   ;;  %v1869_v25 = vld [vmem:[%s2765_s0 + $0x280] ss:$16 sps:$4 sm:$0xff]   ;;  %v1872_v26 = vld [vmem:[%s2765_s0 + $0x288] ss:$16 sps:$4 sm:$0xff]  }
  0x1f   :  { %768 = vmatpush1.bf16.msra.mxu0 %v1780_v30  ;;  %994 = vmatpush1.bf16.msra.mxu1 %v1781_v31  ;;  %v1857_v24 = vld [vmem:[%s2766_s1 + $0x4c] ss:$12 sps:$4 sm:$0xff]   ;;  %v1880_v27 = vld [vmem:[%s2765_s0 + $0x2a4] ss:$16 sps:$4 sm:$0xff]   ;;  %v1878_v29 = vld [vmem:[%s2765_s0 + $0x2a0] ss:$16 sps:$4 sm:$0xff]  }
  0x20   :  { %769 = vmatprep.subr.bf16.mxu0 %v1782_v32  ;;  %995 = vmatprep.subr.bf16.mxu1 %v1784_v33  ;;  %v1883_v28 = vld [vmem:[%s2765_s0 + $0x2ac] ss:$16 sps:$4 sm:$0xff]   ;;  %v1881_v30 = vld [vmem:[%s2765_s0 + $0x2a8] ss:$16 sps:$4 sm:$0xff]   ;;  %v1889_v31 = vld [vmem:[%s2765_s0 + $0x2c4] ss:$16 sps:$4 sm:$0xff]  }
  0x21   :  { %v1892_v32 = vld [vmem:[%s2765_s0 + $0x2cc] ss:$16 sps:$4 sm:$0xff]   ;;  %v1859_v33 = vld [vmem:[%s2766_s1 + $0x48] ss:$12 sps:$4 sm:$0xff]   ;;  %v2070_v48 = vmov 0  }
  0x23   :  { %770 = vmatpush1.bf16.msra.mxu0 %v1786_v34  ;;  %996 = vmatpush1.bf16.msra.mxu1 %v1787_v35  ;;  %v1866_v34 = vld [vmem:[%s2766_s1 + $0x64] ss:$12 sps:$4 sm:$0xff]  }
  0x24   :  { %771 = vmatprep.subr.bf16.mxu0 %v1788_v36  ;;  %997 = vmatprep.subr.bf16.mxu1 %v1790_v37  ;;  %v1887_v35 = vld [vmem:[%s2765_s0 + $0x2c0] ss:$16 sps:$4 sm:$0xff]   ;;  %v1890_v36 = vld [vmem:[%s2765_s0 + $0x2c8] ss:$16 sps:$4 sm:$0xff]   ;;  %v1898_v37 = vld [vmem:[%s2765_s0 + $0x2e4] ss:$16 sps:$4 sm:$0xff]  }
  0x27   :  { %772 = vmatpush1.bf16.msra.mxu0 %v1792_v38  ;;  %998 = vmatpush1.bf16.msra.mxu1 %v1793_v39  ;;  %v1901_v38 = vld [vmem:[%s2765_s0 + $0x2ec] ss:$16 sps:$4 sm:$0xff]   ;;  %v1896_v39 = vld [vmem:[%s2765_s0 + $0x2e0] ss:$16 sps:$4 sm:$0xff]  }
  0x28   :  { %773 = vmatprep.subr.bf16.mxu0 %v1794_v40  ;;  %999 = vmatprep.subr.bf16.mxu1 %v1796_v41  ;;  %v1899_v40 = vld [vmem:[%s2765_s0 + $0x2e8] ss:$16 sps:$4 sm:$0xff]   ;;  %v1868_v41 = vld [vmem:[%s2766_s1 + $0x60] ss:$12 sps:$4 sm:$0xff]  }
  0x2b   :  { %774 = vmatpush1.bf16.msra.mxu0 %v1798_v42  ;;  %1000 = vmatpush1.bf16.msra.mxu1 %v1799_v43  ;;  %v1875_v42 = vld [vmem:[%s2766_s1 + $0x7c] ss:$12 sps:$4 sm:$0xff]   ;;  %v1877_v43 = vld [vmem:[%s2766_s1 + $0x78] ss:$12 sps:$4 sm:$0xff]  }
  0x2c   :  { %775 = vmatprep.subr.bf16.mxu0 %v1800_v44  ;;  %1001 = vmatprep.subr.bf16.mxu1 %v1802_v45  ;;  %v1884_v44 = vld [vmem:[%s2766_s1 + $0x94] ss:$12 sps:$4 sm:$0xff]   ;;  %v1886_v45 = vld [vmem:[%s2766_s1 + $0x90] ss:$12 sps:$4 sm:$0xff]  }
  0x2f   :  { %776 = vmatpush1.bf16.msra.mxu0 %v1804_v46  ;;  %1002 = vmatpush1.bf16.msra.mxu1 %v1805_v47  ;;  %v1893_v46 = vld [vmem:[%s2766_s1 + $0xac] ss:$12 sps:$4 sm:$0xff]   ;;  %v1895_v47 = vld [vmem:[%s2766_s1 + $0xa8] ss:$12 sps:$4 sm:$0xff]  }
  0x30   :  { %777 = vmatprep.subr.bf16.mxu0 %v1806_v49  ;;  %1003 = vmatprep.subr.bf16.mxu1 %v1808_v50  ;;  %v1902_v49 = vld [vmem:[%s2766_s1 + $0x8] ss:$12 sps:$4 sm:$0xff]   ;;  %v1903_v50 = vld [vmem:[%s2766_s1 + $0x20] ss:$12 sps:$4 sm:$0xff]  }
  0x33   :  { %778 = vmatpush1.bf16.msra.mxu0 %v1810_v51  ;;  %1004 = vmatpush1.bf16.msra.mxu1 %v1811_v52  ;;  %v1904_v51 = vld [vmem:[%s2766_s1 + $0x38] ss:$12 sps:$4 sm:$0xff]   ;;  %v1905_v52 = vld [vmem:[%s2766_s1 + $0x50] ss:$12 sps:$4 sm:$0xff]  }
  0x34   :  { %779 = vmatprep.subr.bf16.mxu0 %v1812_v53  ;;  %1005 = vmatprep.subr.bf16.mxu1 %v1814_v54  ;;  %v1906_v53 = vld [vmem:[%s2766_s1 + $0x68] ss:$12 sps:$4 sm:$0xff]   ;;  %v1907_v54 = vld [vmem:[%s2766_s1 + $0x80] ss:$12 sps:$4 sm:$0xff]  }
  0x37   :  { %780 = vmatpush1.bf16.msra.mxu0 %v1816_v55  ;;  %1006 = vmatpush1.bf16.msra.mxu1 %v1817_v56  ;;  %v1908_v55 = vld [vmem:[%s2766_s1 + $0x98] ss:$12 sps:$4 sm:$0xff]   ;;  %v1909_v56 = vld [vmem:[%s2766_s1 + $0xb0] ss:$12 sps:$4 sm:$0xff]  }
  0x38   :  { %781 = vmatprep.subr.bf16.mxu0 %v1818_v57  ;;  %1007 = vmatprep.subr.bf16.mxu1 %v1820_v58 }
  0x3b   :  { %782 = vmatpush1.bf16.msra.mxu0 %v1822_v59  ;;  %1008 = vmatpush1.bf16.msra.mxu1 %v1823_v60 }
  0x3c   :  { %783 = vmatprep.subr.bf16.mxu0 %v1824_v61  ;;  %1009 = vmatprep.subr.bf16.mxu1 %v1826_v62 }
  0x3f   :  { %784 = vmatpush1.bf16.msra.mxu0 %v1828_v63  ;;  %1010 = vmatpush1.bf16.msra.mxu1 %v1829_v0 }
  0x40   :  { %866 = vmatprep.subr.bf16.mxu0 %v1835_v1  ;;  %1092 = vmatprep.subr.bf16.mxu1 %v1838_v2 }
  0x42   :  { %786 = vmatmul.mubr.bf16.vlgmr.msra.gmra.mrb[0].mxu0 %v1830_v3  ;;  %1012 = vmatmul.mubr.bf16.vlgmr.msra.gmra.mrb[0].mxu1 %v1830_v3 }
  0x43   :  { %867 = vmatpush1.bf16.msra.mxu0 %v1833_v4  ;;  %1093 = vmatpush1.bf16.msra.mxu1 %v1836_v5 }
  0x44   :  { %795 = vmatprep.mubr.bf16.mxu0 %v1839_v6  ;;  %1021 = vmatprep.mubr.bf16.mxu1 %v1839_v6 }
  0x45   :  { %868 = vmatprep.subr.bf16.mxu0 %v1844_v7  ;;  %1094 = vmatprep.subr.bf16.mxu1 %v1847_v8 }
  0x47   :  { %869 = vmatpush1.bf16.msra.mxu0 %v1842_v9  ;;  %1095 = vmatpush1.bf16.msra.mxu1 %v1845_v10 }
  0x48   :  { %870 = vmatprep.subr.bf16.mxu0 %v1853_v11  ;;  %1096 = vmatprep.subr.bf16.mxu1 %v1856_v12 }
  0x4a   :  { %796 = vmatmul.mubr.bf16.gmra.mrb[4].mxu0 %v1841_v13  ;;  %1022 = vmatmul.mubr.bf16.gmra.mrb[4].mxu1 %v1841_v13 }
  0x4b   :  { %805 = vmatprep.mubr.bf16.mxu0 %v1848_v14  ;;  %1031 = vmatprep.mubr.bf16.mxu1 %v1848_v14 }
  0x4c   :  { %871 = vmatpush1.bf16.msra.mxu0 %v1851_v15  ;;  %1097 = vmatpush1.bf16.msra.mxu1 %v1854_v16 }
  0x4d   :  { %872 = vmatprep.subr.bf16.mxu0 %v1862_v17  ;;  %1098 = vmatprep.subr.bf16.mxu1 %v1865_v18 }
  0x50   :  { %873 = vmatpush1.bf16.msra.mxu0 %v1860_v19  ;;  %1099 = vmatpush1.bf16.msra.mxu1 %v1863_v20 }
  0x51   :  { %874 = vmatprep.subr.bf16.mxu0 %v1871_v22  ;;  %1100 = vmatprep.subr.bf16.mxu1 %v1874_v23 }
  0x52   :  { %806 = vmatmul.mubr.bf16.gmra.mrb[8].mxu0 %v1850_v21  ;;  %1032 = vmatmul.mubr.bf16.gmra.mrb[8].mxu1 %v1850_v21 }
  0x53   :  { %815 = vmatprep.mubr.bf16.mxu0 %v1857_v24  ;;  %1041 = vmatprep.mubr.bf16.mxu1 %v1857_v24 }
  0x54   :  { %875 = vmatpush1.bf16.msra.mxu0 %v1869_v25  ;;  %1101 = vmatpush1.bf16.msra.mxu1 %v1872_v26 }
  0x55   :  { %876 = vmatprep.subr.bf16.mxu0 %v1880_v27  ;;  %1102 = vmatprep.subr.bf16.mxu1 %v1883_v28 }
  0x58   :  { %877 = vmatpush1.bf16.msra.mxu0 %v1878_v29  ;;  %1103 = vmatpush1.bf16.msra.mxu1 %v1881_v30 }
  0x59   :  { %878 = vmatprep.subr.bf16.mxu0 %v1889_v31  ;;  %1104 = vmatprep.subr.bf16.mxu1 %v1892_v32 }
  0x5a   :  { %816 = vmatmul.mubr.bf16.gmra.mrb[12].mxu0 %v1859_v33  ;;  %1042 = vmatmul.mubr.bf16.gmra.mrb[12].mxu1 %v1859_v33 }
  0x5b   :  { %825 = vmatprep.mubr.bf16.mxu0 %v1866_v34  ;;  %1051 = vmatprep.mubr.bf16.mxu1 %v1866_v34 }
  0x5c   :  { %879 = vmatpush1.bf16.msra.mxu0 %v1887_v35  ;;  %1105 = vmatpush1.bf16.msra.mxu1 %v1890_v36 }
  0x5d   :  { %880 = vmatprep.subr.bf16.mxu0 %v1898_v37  ;;  %1106 = vmatprep.subr.bf16.mxu1 %v1901_v38 }
  0x60   :  { %881 = vmatpush1.bf16.msra.mxu0 %v1896_v39  ;;  %1107 = vmatpush1.bf16.msra.mxu1 %v1899_v40 }
  0x62   :  { %826 = vmatmul.mubr.bf16.gmra.mrb[16].mxu0 %v1868_v41  ;;  %1052 = vmatmul.mubr.bf16.gmra.mrb[16].mxu1 %v1868_v41 }
  0x63   :  { %835 = vmatprep.mubr.bf16.mxu0 %v1875_v42  ;;  %1061 = vmatprep.mubr.bf16.mxu1 %v1875_v42 }
  0x6a   :  { %836 = vmatmul.mubr.bf16.gmra.mrb[20].mxu0 %v1877_v43  ;;  %1062 = vmatmul.mubr.bf16.gmra.mrb[20].mxu1 %v1877_v43 }
  0x6b   :  { %845 = vmatprep.mubr.bf16.mxu0 %v1884_v44  ;;  %1071 = vmatprep.mubr.bf16.mxu1 %v1884_v44 }
  0x72   :  { %846 = vmatmul.mubr.bf16.gmra.mrb[24].mxu0 %v1886_v45  ;;  %1072 = vmatmul.mubr.bf16.gmra.mrb[24].mxu1 %v1886_v45 }
  0x73   :  { %855 = vmatprep.mubr.bf16.mxu0 %v1893_v46  ;;  %1081 = vmatprep.mubr.bf16.mxu1 %v1893_v46 }
  0x7a   :  { %856 = vmatmul.mubr.bf16.gmra.mrb[28].mxu0 %v1895_v47  ;;  %1082 = vmatmul.mubr.bf16.gmra.mrb[28].mxu1 %v1895_v47 }
  0x7b   :  { %898 = vmatprep.mubr.bf16.mxu0 %v2070_v48  ;;  %1124 = vmatprep.mubr.bf16.mxu1 %v2070_v48 }
  0x82   :  { %899 = vmatmul.mubr.bf16.vlgmr.msra.gmra.mrb[0].mxu0 %v1902_v49  ;;  %1125 = vmatmul.mubr.bf16.vlgmr.msra.gmra.mrb[0].mxu1 %v1902_v49 }
  0x83   :  { %908 = vmatprep.mubr.bf16.mxu0 %v2070_v48  ;;  %1134 = vmatprep.mubr.bf16.mxu1 %v2070_v48 }
  0x8a   :  { %909 = vmatmul.mubr.bf16.gmra.mrb[4].mxu0 %v1903_v50  ;;  %1135 = vmatmul.mubr.bf16.gmra.mrb[4].mxu1 %v1903_v50 }
  0x8b   :  { %918 = vmatprep.mubr.bf16.mxu0 %v2070_v48  ;;  %1144 = vmatprep.mubr.bf16.mxu1 %v2070_v48 }
  0x92   :  { %919 = vmatmul.mubr.bf16.gmra.mrb[8].mxu0 %v1904_v51  ;;  %1145 = vmatmul.mubr.bf16.gmra.mrb[8].mxu1 %v1904_v51 }
  0x93   :  { %928 = vmatprep.mubr.bf16.mxu0 %v2070_v48  ;;  %1154 = vmatprep.mubr.bf16.mxu1 %v2070_v48 }
  0x9a   :  { %929 = vmatmul.mubr.bf16.gmra.mrb[12].mxu0 %v1905_v52  ;;  %1155 = vmatmul.mubr.bf16.gmra.mrb[12].mxu1 %v1905_v52 }
  0x9b   :  { %938 = vmatprep.mubr.bf16.mxu0 %v2070_v48  ;;  %1164 = vmatprep.mubr.bf16.mxu1 %v2070_v48 }
  0xa2   :  { %939 = vmatmul.mubr.bf16.gmra.mrb[16].mxu0 %v1906_v53  ;;  %1165 = vmatmul.mubr.bf16.gmra.mrb[16].mxu1 %v1906_v53 }
  0xa3   :  { %948 = vmatprep.mubr.bf16.mxu0 %v2070_v48  ;;  %1174 = vmatprep.mubr.bf16.mxu1 %v2070_v48 }
  0xaa   :  { %949 = vmatmul.mubr.bf16.gmra.mrb[20].mxu0 %v1907_v54  ;;  %1175 = vmatmul.mubr.bf16.gmra.mrb[20].mxu1 %v1907_v54 }
  0xab   :  { %958 = vmatprep.mubr.bf16.mxu0 %v2070_v48  ;;  %1184 = vmatprep.mubr.bf16.mxu1 %v2070_v48 }
  0xb2   :  { %959 = vmatmul.mubr.bf16.gmra.mrb[24].mxu0 %v1908_v55  ;;  %1185 = vmatmul.mubr.bf16.gmra.mrb[24].mxu1 %v1908_v55 }
  0xb3   :  { %968 = vmatprep.mubr.bf16.mxu0 %v2070_v48  ;;  %1194 = vmatprep.mubr.bf16.mxu1 %v2070_v48 }
  0xba   :  { %969 = vmatmul.mubr.bf16.gmra.mrb[28].mxu0 %v1909_v56  ;;  %1195 = vmatmul.mubr.bf16.gmra.mrb[28].mxu1 %v1909_v56 }
 0x155   :  { %v900_v57 = vpop.f32.mrb[0].mxu0  ;;  %v1126_v58 = vpop.f32.mrb[0].mxu1 }
 0x156   :  { %v1205_v59 = vmul.f32 0.5, %v900_v57  ;;  %v1207_v60 = vmul.f32 0.5, %v1126_v58  ;;  %v902_v61 = vpop.f32.mrb[1].mxu0  ;;  %v1128_v62 = vpop.f32.mrb[1].mxu1 }
 0x157   :  { %v1206_v63 = vmul.f32 0.5, %v902_v61  ;;  %v1208_v0 = vmul.f32 0.5, %v1128_v62  ;;  %v904_v1 = vpop.f32.mrb[2].mxu0  ;;  %v1130_v2 = vpop.f32.mrb[2].mxu1 }
 0x158   :  { %1910 = vtanh.f32 %v1205_v59  ;;  %v1209_v3 = vmul.f32 0.5, %v904_v1  ;;  %v906_v4 = vpop.f32.mrb[3].mxu0  ;;  %v1132_v5 = vpop.f32.mrb[3].mxu1  ;;  %v1211_v6 = vmul.f32 0.5, %v1130_v2 }
 0x159   :  { %1912 = vtanh.f32 %v1207_v60  ;;  %v1210_v7 = vmul.f32 0.5, %v906_v4  ;;  %v1212_v8 = vmul.f32 0.5, %v1132_v5 }
 0x15a   :  { %1914 = vtanh.f32 %v1206_v63 }
 0x15b   :  { %1916 = vtanh.f32 %v1208_v0 }
 0x15c   :  { %1918 = vtanh.f32 %v1209_v3 }
 0x15d   :  { %1920 = vtanh.f32 %v1211_v6  ;;  %v910_v9 = vpop.f32.mrb[4].mxu0  ;;  %v1136_v10 = vpop.f32.mrb[4].mxu1 }
 0x15e   :  { %1922 = vtanh.f32 %v1210_v7  ;;  %v1213_v11 = vmul.f32 0.5, %v910_v9  ;;  %v1215_v12 = vmul.f32 0.5, %v1136_v10  ;;  %v912_v13 = vpop.f32.mrb[5].mxu0  ;;  %v1138_v14 = vpop.f32.mrb[5].mxu1 }
 0x15f   :  { %1924 = vtanh.f32 %v1212_v8  ;;  %v1214_v15 = vmul.f32 0.5, %v912_v13  ;;  %v1216_v16 = vmul.f32 0.5, %v1138_v14  ;;  %v914_v17 = vpop.f32.mrb[6].mxu0  ;;  %v1140_v18 = vpop.f32.mrb[6].mxu1 }
 0x160   :  { %1926 = vtanh.f32 %v1213_v11  ;;  %v1217_v19 = vmul.f32 0.5, %v914_v17  ;;  %v916_v20 = vpop.f32.mrb[7].mxu0  ;;  %v1142_v21 = vpop.f32.mrb[7].mxu1  ;;  %v1219_v22 = vmul.f32 0.5, %v1140_v18 }
 0x161   :  { %1928 = vtanh.f32 %v1215_v12  ;;  %v1218_v24 = vmul.f32 0.5, %v916_v20  ;;  %v1220_v26 = vmul.f32 0.5, %v1142_v21 }
 0x162   :  { %v1911_v23 = vpop.eup %1910  ;;  %1930 = vtanh.f32 %v1214_v15 }
 0x163   :  { %v1913_v25 = vpop.eup %1912  ;;  %1932 = vtanh.f32 %v1216_v16  ;;  %v1237_v48 = vadd.f32 1.0, %v1911_v23 }
 0x164   :  { %v1915_v27 = vpop.eup %1914  ;;  %1934 = vtanh.f32 %v1217_v19  ;;  %v1239_v51 = vadd.f32 1.0, %v1913_v25 }
 0x165   :  { %v1917_v28 = vpop.eup %1916  ;;  %1936 = vtanh.f32 %v1219_v22  ;;  %v920_v29 = vpop.f32.mrb[8].mxu0  ;;  %v2458_v62 = vmul.f32 0.5, %v1237_v48  ;;  %v1238_v63 = vadd.f32 1.0, %v1915_v27 }
 0x166   :  { %v1146_v30 = vpop.f32.mrb[8].mxu1  ;;  %v1919_v31 = vpop.eup %1918  ;;  %1938 = vtanh.f32 %v1218_v24  ;;  %v1269_v32 = vmul.f32 0.5, %v920_v29  ;;  %v2462_v4 = vmul.f32 0.5, %v1239_v51  ;;  %v1240_v5 = vadd.f32 1.0, %v1917_v28 }
 0x167   :  { %v922_v33 = vpop.f32.mrb[9].mxu0  ;;  %v1148_v34 = vpop.f32.mrb[9].mxu1  ;;  %1940 = vtanh.f32 %v1220_v26  ;;  %v1271_v36 = vmul.f32 0.5, %v1146_v30  ;;  %v1241_v10 = vadd.f32 1.0, %v1919_v31  ;;  %v2466_v22 = vmul.f32 0.5, %v1238_v63 }
 0x168   :  { %v1921_v35 = vpop.eup %1920  ;;  %v924_v37 = vpop.f32.mrb[10].mxu0  ;;  %1942 = vtanh.f32 %v1269_v32  ;;  %v1270_v40 = vmul.f32 0.5, %v922_v33  ;;  %v1272_v44 = vmul.f32 0.5, %v1148_v34  ;;  %v2468_v26 = vmul.f32 0.5, %v1240_v5  ;;  %v1430_v5 = vld [vmem:[%s2767_s2 + $0x8] sm:$0xff] }
 0x169   :  { %v1150_v38 = vpop.f32.mrb[10].mxu1  ;;  %v1923_v39 = vpop.eup %1922  ;;  %1944 = vtanh.f32 %v1271_v36  ;;  %v1273_v46 = vmul.f32 0.5, %v924_v37  ;;  %v1243_v11 = vadd.f32 1.0, %v1921_v35  ;;  %v2470_v27 = vmul.f32 0.5, %v1241_v10 }
 0x16a   :  { %v926_v41 = vpop.f32.mrb[11].mxu0  ;;  %v1152_v42 = vpop.f32.mrb[11].mxu1  ;;  %1946 = vtanh.f32 %v1270_v40  ;;  %v1275_v49 = vmul.f32 0.5, %v1150_v38  ;;  %v1242_v14 = vadd.f32 1.0, %v1923_v39 }
 0x16b   :  { %v1925_v43 = vpop.eup %1924  ;;  %1948 = vtanh.f32 %v1272_v44  ;;  %v1274_v52 = vmul.f32 0.5, %v926_v41  ;;  %v1276_v54 = vmul.f32 0.5, %v1152_v42  ;;  %v2472_v32 = vmul.f32 0.5, %v1243_v11  ;;  %v1432_v11 = vld [vmem:[%s2767_s2 + $0x18] sm:$0xff] }
 0x16c   :  { %v1927_v45 = vpop.eup %1926  ;;  %1950 = vtanh.f32 %v1273_v46  ;;  %v1244_v15 = vadd.f32 1.0, %v1925_v43  ;;  %v2474_v33 = vmul.f32 0.5, %v1242_v14 }
 0x16d   :  { %v1929_v47 = vpop.eup %1928  ;;  %1952 = vtanh.f32 %v1275_v49  ;;  %v930_v55 = vpop.f32.mrb[12].mxu0  ;;  %v1245_v18 = vadd.f32 1.0, %v1927_v45 }
 0x16e   :  { %v1931_v50 = vpop.eup %1930  ;;  %v1156_v56 = vpop.f32.mrb[12].mxu1  ;;  %1954 = vtanh.f32 %v1274_v52  ;;  %v1277_v58 = vmul.f32 0.5, %v930_v55  ;;  %v1247_v19 = vadd.f32 1.0, %v1929_v47  ;;  %v2476_v34 = vmul.f32 0.5, %v1244_v15 }
 0x16f   :  { %v1933_v53 = vpop.eup %1932  ;;  %v932_v59 = vpop.f32.mrb[13].mxu0  ;;  %1956 = vtanh.f32 %v1276_v54  ;;  %v1279_v0 = vmul.f32 0.5, %v1156_v56  ;;  %v1246_v23 = vadd.f32 1.0, %v1931_v50  ;;  %v2478_v38 = vmul.f32 0.5, %v1245_v18 }
 0x170   :  { %v1935_v57 = vpop.eup %1934  ;;  %v1158_v60 = vpop.f32.mrb[13].mxu1  ;;  %1958 = vtanh.f32 %v1277_v58  ;;  %v1278_v6 = vmul.f32 0.5, %v932_v59  ;;  %v2480_v39 = vmul.f32 0.5, %v1247_v19  ;;  %v1248_v40 = vadd.f32 1.0, %v1933_v53 }
 0x171   :  { %v2456_v61 = vpop.eup %1936  ;;  %v934_v1 = vpop.f32.mrb[14].mxu0  ;;  %1960 = vtanh.f32 %v1279_v0  ;;  %v1280_v12 = vmul.f32 0.5, %v1158_v60  ;;  %v2482_v44 = vmul.f32 0.5, %v1246_v23  ;;  %v1249_v45 = vadd.f32 1.0, %v1935_v57 }
 0x172   :  { %v1160_v2 = vpop.f32.mrb[14].mxu1  ;;  %v2460_v3 = vpop.eup %1938  ;;  %1962 = vtanh.f32 %v1278_v6  ;;  %v1281_v16 = vmul.f32 0.5, %v934_v1  ;;  %v1251_v55 = vadd.f32 1.0, %v2456_v61  ;;  %v2485_v59 = vmul.f32 0.5, %v1248_v40  ;;  %v1431_v61 = vld [vmem:[%s2767_s2 + $0x10] sm:$0xff] }
 0x173   :  { %v936_v7 = vpop.f32.mrb[15].mxu0  ;;  %v1162_v8 = vpop.f32.mrb[15].mxu1  ;;  %1964 = vtanh.f32 %v1280_v12  ;;  %v1283_v20 = vmul.f32 0.5, %v1160_v2  ;;  %v1250_v57 = vadd.f32 1.0, %v2460_v3  ;;  %v2488_v0 = vmul.f32 0.5, %v1249_v45  ;;  %v1429_v2 = vld [vmem:[%s2767_s2] sm:$0xff] }
 0x174   :  { %v2464_v9 = vpop.eup %1940  ;;  %1966 = vtanh.f32 %v1281_v16  ;;  %v1282_v24 = vmul.f32 0.5, %v936_v7  ;;  %v1284_v28 = vmul.f32 0.5, %v1162_v8  ;;  %v2504_v15 = vmul.f32 0.5, %v1251_v55 }
 0x175   :  { %v1943_v13 = vpop.eup %1942  ;;  %1968 = vtanh.f32 %v1283_v20  ;;  %v940_v29 = vpop.f32.mrb[16].mxu0  ;;  %v2511_v23 = vmul.f32 0.5, %v1250_v57 }
 0x176   :  { %v1945_v17 = vpop.eup %1944  ;;  %v1166_v30 = vpop.f32.mrb[16].mxu1  ;;  %1970 = vtanh.f32 %v1282_v24  ;;  %v1301_v46 = vadd.f32 1.0, %v1943_v13  ;;  %v1435_v24 = vld [vmem:[%s2767_s2 + $0x30] sm:$0xff] }
 0x177   :  { %v1947_v21 = vpop.eup %1946  ;;  %v942_v35 = vpop.f32.mrb[17].mxu0  ;;  %1972 = vtanh.f32 %v1284_v28  ;;  %v1303_v50 = vadd.f32 1.0, %v1945_v17  ;;  %v1433_v17 = vld [vmem:[%s2767_s2 + $0x20] sm:$0xff] }
 0x178   :  { %v1949_v25 = vpop.eup %1948  ;;  %v1168_v36 = vpop.f32.mrb[17].mxu1  ;;  %1974 = vtanh.f32 %v940_v29  ;;  %v1302_v51 = vadd.f32 1.0, %v1947_v21  ;;  %v1317_v1 = vmul.f32 0.5, %v1301_v46 }
 0x179   :  { %v1951_v31 = vpop.eup %1950  ;;  %v944_v41 = vpop.f32.mrb[18].mxu0  ;;  %v1304_v52 = vadd.f32 1.0, %v1949_v25  ;;  %1976 = vtanh.f32 %v1166_v30  ;;  %v1319_v7 = vmul.f32 0.5, %v1303_v50 }
 0x17a   :  { %v1953_v37 = vpop.eup %1952  ;;  %v1170_v42 = vpop.f32.mrb[18].mxu1  ;;  %v1305_v53 = vadd.f32 1.0, %v1951_v31  ;;  %1978 = vtanh.f32 %v942_v35  ;;  %v1318_v8 = vmul.f32 0.5, %v1302_v51  ;;  %v1445_v35 = vmul.f32 %v1429_v2, %v1317_v1 }
 0x17b   :  { %v1955_v43 = vpop.eup %1954  ;;  %v946_v47 = vpop.f32.mrb[19].mxu0  ;;  %v1307_v56 = vadd.f32 1.0, %v1953_v37  ;;  %1980 = vtanh.f32 %v1168_v36  ;;  %v1320_v10 = vmul.f32 0.5, %v1304_v52  ;;  %v1434_v36 = vld [vmem:[%s2767_s2 + $0x28] sm:$0xff]  ;;  %v1447_v45 = vmul.f32 %v1431_v61, %v1319_v7 }
 0x17c   :  { %v1172_v48 = vpop.f32.mrb[19].mxu1  ;;  %v1957_v49 = vpop.eup %1956  ;;  %v1306_v60 = vadd.f32 1.0, %v1955_v43  ;;  %1982 = vtanh.f32 %v944_v41  ;;  %v1321_v16 = vmul.f32 0.5, %v1305_v53  ;;  %v1446_v46 = vmul.f32 %v1430_v5, %v1318_v8 }
 0x17d   :  { %v1959_v54 = vpop.eup %1958  ;;  %v1308_v6 = vadd.f32 1.0, %v1957_v49  ;;  %1984 = vtanh.f32 %v1170_v42  ;;  %v950_v12 = vpop.f32.mrb[20].mxu0  ;;  %v1323_v18 = vmul.f32 0.5, %v1307_v56 }
 0x17e   :  { %v1961_v58 = vpop.eup %1960  ;;  %v1176_v13 = vpop.f32.mrb[20].mxu1  ;;  %1986 = vtanh.f32 %v946_v47  ;;  %v1322_v25 = vmul.f32 0.5, %v1306_v60  ;;  %v1309_v28 = vadd.f32 1.0, %v1959_v54  ;;  %v1448_v47 = vmul.f32 %v1432_v11, %v1320_v10  ;;  %v1437_v60 = vld [vmem:[%s2767_s2 + $0x40] sm:$0xff] }
 0x17f   :  { %v1963_v63 = vpop.eup %1962  ;;  %v952_v19 = vpop.f32.mrb[21].mxu0  ;;  %1988 = vtanh.f32 %v1172_v48  ;;  %v1324_v37 = vmul.f32 0.5, %v1308_v6  ;;  %v1311_v40 = vadd.f32 1.0, %v1961_v58  ;;  %v1436_v48 = vld [vmem:[%s2767_s2 + $0x38] sm:$0xff]  ;;  %v1449_v50 = vmul.f32 %v1433_v17, %v1321_v16 }
 0x180   :  { %v1965_v3 = vpop.eup %1964  ;;  %v1178_v20 = vpop.f32.mrb[21].mxu1  ;;  %1990 = vtanh.f32 %v950_v12  ;;  %v1451_v51 = vmul.f32 %v1435_v24, %v1323_v18  ;;  %v1310_v52 = vadd.f32 1.0, %v1963_v63  ;;  %v1450_v55 = vmul.f32 %v1434_v36, %v1322_v25  ;;  %v1439_v63 = vld [vmem:[%s2767_s2 + $0x50] sm:$0xff] }
 0x181   :  { %v2502_v14 = vpop.eup %1966  ;;  %v954_v29 = vpop.f32.mrb[22].mxu0  ;;  %1992 = vtanh.f32 %v1176_v13  ;;  %v1325_v53 = vmul.f32 0.5, %v1309_v28  ;;  %v1452_v57 = vmul.f32 %v1436_v48, %v1324_v37  ;;  %v1327_v1 = vmul.f32 0.5, %v1311_v40 }
 0x182   :  { %v2509_v21 = vpop.eup %1968  ;;  %v1180_v30 = vpop.f32.mrb[22].mxu1  ;;  %1994 = vtanh.f32 %v952_v19  ;;  %v1312_v5 = vadd.f32 1.0, %v1965_v3  ;;  %v1326_v11 = vmul.f32 0.5, %v1310_v52  ;;  %v1313_v18 = vadd.f32 1.0, %v2502_v14 }
 0x183   :  { %v2516_v31 = vpop.eup %1970  ;;  %v956_v41 = vpop.f32.mrb[23].mxu0  ;;  %1996 = vtanh.f32 %v1178_v20  ;;  %v1453_v3 = vmul.f32 %v1437_v60, %v1325_v53  ;;  %v1455_v28 = vmul.f32 %v1439_v63, %v1327_v1 }
 0x184   :  { %v2521_v42 = vpop.f32.mrb[23].mxu1  ;;  %v2523_v43 = vpop.eup %1972  ;;  %1998 = vtanh.f32 %v954_v29  ;;  %v1315_v29 = vadd.f32 1.0, %v2509_v21  ;;  %v1328_v37 = vmul.f32 0.5, %v1312_v5  ;;  %v1314_v40 = vadd.f32 1.0, %v2516_v31  ;;  %v1440_v31 = vld [vmem:[%s2767_s2 + $0x58] sm:$0xff] }
 0x185   :  { %v1975_v49 = vpop.eup %1974  ;;  %2000 = vtanh.f32 %v1180_v30  ;;  %v2537_v7 = vpop.f32.mrb[24].mxu0 }
 0x186   :  { %v1977_v54 = vpop.eup %1976  ;;  %v1413_v56 = vmul.f32 %v1975_v49, %v2458_v62  ;;  %v2539_v8 = vpop.f32.mrb[24].mxu1  ;;  %2002 = vtanh.f32 %v956_v41  ;;  %v1329_v49 = vmul.f32 0.5, %v1313_v18 }
 0x187   :  { %v1979_v58 = vpop.eup %1978  ;;  %v1415_v2 = vmul.f32 %v1977_v54, %v2462_v4  ;;  %v2542_v13 = vpop.f32.mrb[25].mxu0 }
 0x188   :  { %v1981_v61 = vpop.eup %1980  ;;  %v1461_v6 = vadd.f32 %v1445_v35, %v1413_v56  ;;  %v1414_v62 = vmul.f32 %v1979_v58, %v2466_v22  ;;  %v2544_v16 = vpop.f32.mrb[25].mxu1  ;;  %v1438_v22 = vld [vmem:[%s2767_s2 + $0x48] sm:$0xff] }
 0x189   :  { %v1983_v10 = vpop.eup %1982  ;;  %v1463_v12 = vadd.f32 %v1447_v45, %v1415_v2  ;;  %v1416_v4 = vmul.f32 %v1981_v61, %v2468_v26  ;;  %v2554_v20 = vpop.f32.mrb[26].mxu0  ;;  %v1442_v61 = vld [vmem:[%s2767_s2 + $0x68] sm:$0xff] }
 0x18a   :  { %v1985_v17 = vpop.eup %1984  ;;  %1525 = vst [vmem:[%s2768_s4] sm:$0xff] %v1461_v6  ;;  %v1462_v19 = vadd.f32 %v1446_v46, %v1414_v62  ;;  %v1417_v26 = vmul.f32 %v1983_v10, %v2470_v27  ;;  %v2556_v24 = vpop.f32.mrb[26].mxu1  ;;  %v1454_v46 = vmul.f32 %v1438_v22, %v1326_v11  ;;  %2004 = vtanh.f32 %v1461_v6 }
 0x18b   :  { %v1987_v25 = vpop.eup %1986  ;;  %1527 = vst [vmem:[%s2768_s4 + $0x10] sm:$0xff] %v1463_v12  ;;  %v1464_v14 = vadd.f32 %v1448_v47, %v1416_v4  ;;  %v1419_v30 = vmul.f32 %v1985_v17, %v2472_v32  ;;  %v2563_v35 = vpop.f32.mrb[27].mxu0  ;;  %2006 = vtanh.f32 %v1463_v12 }
 0x18c   :  { %v2565_v36 = vpop.f32.mrb[27].mxu1  ;;  %v1989_v27 = vpop.eup %1988  ;;  %1526 = vst [vmem:[%s2768_s4 + $0x8] sm:$0xff] %v1462_v19  ;;  %v1465_v21 = vadd.f32 %v1449_v50, %v1417_v26  ;;  %v1418_v41 = vmul.f32 %v1987_v25, %v2474_v33  ;;  %2008 = vtanh.f32 %v1462_v19 }
 0x18d   :  { %v1991_v45 = vpop.eup %1990  ;;  %1528 = vst [vmem:[%s2768_s4 + $0x18] sm:$0xff] %v1464_v14  ;;  %v1467_v32 = vadd.f32 %v1451_v51, %v1419_v30  ;;  %v1420_v47 = vmul.f32 %v1989_v27, %v2476_v34  ;;  %v1441_v51 = vld [vmem:[%s2767_s2 + $0x60] sm:$0xff]  ;;  %v1331_v34 = vmul.f32 0.5, %v1315_v29  ;;  %2010 = vtanh.f32 %v1464_v14  ;;  %v2597_v1 = vpop.f32.mrb[28].mxu0 }
 0x18e   :  { %v1993_v48 = vpop.eup %1992  ;;  %1529 = vst [vmem:[%s2768_s4 + $0x20] sm:$0xff] %v1465_v21  ;;  %v1466_v33 = vadd.f32 %v1450_v55, %v1418_v41  ;;  %v1421_v50 = vmul.f32 %v1991_v45, %v2478_v38  ;;  %v1443_v55 = vld [vmem:[%s2767_s2 + $0x70] sm:$0xff]  ;;  %v1330_v38 = vmul.f32 0.5, %v1314_v40  ;;  %v2599_v2 = vpop.f32.mrb[28].mxu1  ;;  %2012 = vtanh.f32 %v1465_v21 }
 0x18f   :  { %v1995_v52 = vpop.eup %1994  ;;  %1531 = vst [vmem:[%s2768_s4 + $0x30] sm:$0xff] %v1467_v32  ;;  %v1468_v54 = vadd.f32 %v1452_v57, %v1420_v47  ;;  %v1423_v53 = vmul.f32 %v1993_v48, %v2480_v39  ;;  %v1456_v39 = vmul.f32 %v1440_v31, %v1328_v37  ;;  %v2608_v6 = vpop.f32.mrb[29].mxu0  ;;  %v1457_v10 = vmul.f32 %v1441_v51, %v1329_v49 }
 0x190   :  { %v1997_v56 = vpop.eup %1996  ;;  %1530 = vst [vmem:[%s2768_s4 + $0x28] sm:$0xff] %v1466_v33  ;;  %v1469_v58 = vadd.f32 %v1453_v3, %v1421_v50  ;;  %v1422_v60 = vmul.f32 %v1995_v52, %v2482_v44  ;;  %v2610_v44 = vpop.f32.mrb[29].mxu1  ;;  %2014 = vtanh.f32 %v1467_v32  ;;  %v1458_v25 = vmul.f32 %v1442_v61, %v1330_v38 }
 0x191   :  { %v1999_v57 = vpop.eup %1998  ;;  %1532 = vst [vmem:[%s2768_s4 + $0x38] sm:$0xff] %v1468_v54  ;;  %v1471_v63 = vadd.f32 %v1455_v28, %v1423_v53  ;;  %v1424_v5 = vmul.f32 %v1997_v56, %v2485_v59  ;;  %v2616_v4 = vpop.f32.mrb[30].mxu0  ;;  %v1459_v59 = vmul.f32 %v1443_v55, %v1331_v34  ;;  %2016 = vtanh.f32 %v1466_v33 }
 0x192   :  { %v2001_v62 = vpop.eup %2000  ;;  %1533 = vst [vmem:[%s2768_s4 + $0x40] sm:$0xff] %v1469_v58  ;;  %v1470_v11 = vadd.f32 %v1454_v46, %v1422_v60  ;;  %v1425_v12 = vmul.f32 %v1999_v57, %v2488_v0  ;;  %v2618_v17 = vpop.f32.mrb[30].mxu1  ;;  %2018 = vtanh.f32 %v1468_v54  ;;  %v1349_v14 = vmul.f32 0.5, %v2537_v7 }
 0x193   :  { %v2003_v3 = vpop.eup %2002  ;;  %1535 = vst [vmem:[%s2768_s4 + $0x50] sm:$0xff] %v1471_v63  ;;  %v1472_v22 = vadd.f32 %v1456_v39, %v1424_v5  ;;  %v1427_v18 = vmul.f32 %v2001_v62, %v2504_v15  ;;  %v2624_v19 = vpop.f32.mrb[31].mxu0  ;;  %2020 = vtanh.f32 %v1469_v58  ;;  %v1350_v7 = vmul.f32 0.5, %v2542_v13 }
 0x194   :  { %v2626_v26 = vpop.f32.mrb[31].mxu1  ;;  %1534 = vst [vmem:[%s2768_s4 + $0x48] sm:$0xff] %v1470_v11  ;;  %v2631_v0 = vadd.f32 %v1457_v10, %v1425_v12  ;;  %v1426_v28 = vmul.f32 %v2003_v3, %v2511_v23  ;;  %2022 = vtanh.f32 %v1471_v63  ;;  %v2646_v30 = vpop.eup %2004  ;;  %v1351_v23 = vmul.f32 0.5, %v2539_v8 }
 0x195   :  { %1536 = vst [vmem:[%s2768_s4 + $0x58] sm:$0xff] %v1472_v22  ;;  %v2637_v15 = vadd.f32 %v1459_v59, %v1427_v18  ;;  %2024 = vtanh.f32 %v1470_v11  ;;  %v2653_v27 = vpop.eup %2006  ;;  %v1352_v40 = vmul.f32 0.5, %v2544_v16  ;;  %v1353_v8 = vmul.f32 0.5, %v2554_v20 }
 0x196   :  { %1537 = vst [vmem:[%s2768_s4 + $0x60] sm:$0xff] %v2631_v0  ;;  %v2643_v29 = vadd.f32 %v1458_v25, %v1426_v28  ;;  %2026 = vtanh.f32 %v1472_v22  ;;  %v2660_v37 = vpop.eup %2008  ;;  %v1355_v45 = vmul.f32 0.5, %v2556_v24  ;;  %v1316_v13 = vadd.f32 1.0, %v2523_v43 }
 0x197   :  { %1539 = vst [vmem:[%s2768_s4 + $0x70] sm:$0xff] %v2637_v15  ;;  %2028 = vtanh.f32 %v2521_v42  ;;  %v2664_v21 = vpop.eup %2010  ;;  %v1354_v32 = vmul.f32 0.5, %v2563_v35  ;;  %v1356_v16 = vmul.f32 0.5, %v2565_v36  ;;  %v1252_v20 = vadd.f32 1.0, %v2464_v9  ;;  %v1444_v9 = vld [vmem:[%s2767_s2 + $0x78] sm:$0xff] }
 0x198   :  { %1538 = vst [vmem:[%s2768_s4 + $0x68] sm:$0xff] %v2643_v29  ;;  %2030 = vtanh.f32 %v1349_v14  ;;  %v2667_v41 = vpop.eup %2012  ;;  %v1357_v48 = vmul.f32 0.5, %v2597_v1  ;;  %v1359_v43 = vmul.f32 0.5, %v2599_v2  ;;  %v1332_v35 = vmul.f32 0.5, %v1316_v13 }
 0x199   :  { %2032 = vtanh.f32 %v1351_v23  ;;  %v1358_v49 = vmul.f32 0.5, %v2608_v6  ;;  %v1360_v36 = vmul.f32 0.5, %v2610_v44  ;;  %v1268_v52 = vmul.f32 0.5, %v1252_v20 }
 0x19a   :  { %v2670_v46 = vpop.eup %2014  ;;  %2034 = vtanh.f32 %v1350_v7  ;;  %v1361_v51 = vmul.f32 0.5, %v2616_v4  ;;  %v1363_v54 = vmul.f32 0.5, %v2618_v17  ;;  %v1460_v56 = vmul.f32 %v1444_v9, %v1332_v35 }
 0x19b   :  { %v2674_v42 = vpop.eup %2016  ;;  %2036 = vtanh.f32 %v1352_v40  ;;  %v1362_v60 = vmul.f32 0.5, %v2624_v19  ;;  %v1364_v39 = vmul.f32 0.5, %v2626_v26 }
 0x19c   :  { %v2677_v47 = vpop.eup %2018  ;;  %2038 = vtanh.f32 %v1353_v8 }
 0x19d   :  { %v2681_v24 = vpop.eup %2020  ;;  %2040 = vtanh.f32 %v1355_v45 }
 0x19e   :  { %v2684_v31 = vpop.eup %2022  ;;  %2042 = vtanh.f32 %v1354_v32 }
 0x19f   :  { %v2687_v33 = vpop.eup %2024  ;;  %2044 = vtanh.f32 %v1356_v16 }
 0x1a0   :  { %v2693_v50 = vpop.eup %2026  ;;  %2046 = vtanh.f32 %v1357_v48 }
 0x1a1   :  { %v2029_v34 = vpop.eup %2028  ;;  %2048 = vtanh.f32 %v1359_v43 }
 0x1a2   :  { %v2031_v53 = vpop.eup %2030  ;;  %v1428_v55 = vmul.f32 %v2029_v34, %v1268_v52  ;;  %2050 = vtanh.f32 %v1358_v49 }
 0x1a3   :  { %v2033_v38 = vpop.eup %2032  ;;  %v1381_v58 = vadd.f32 1.0, %v2031_v53  ;;  %2052 = vtanh.f32 %v1360_v36 }
 0x1a4   :  { %v2035_v1 = vpop.eup %2034  ;;  %v1476_v2 = vadd.f32 %v1460_v56, %v1428_v55  ;;  %v1383_v57 = vadd.f32 1.0, %v2033_v38  ;;  %2054 = vtanh.f32 %v1361_v51 }
 0x1a5   :  { %v2037_v61 = vpop.eup %2036  ;;  %v1397_v63 = vmul.f32 0.5, %v1381_v58  ;;  %v1382_v5 = vadd.f32 1.0, %v2035_v1  ;;  %2056 = vtanh.f32 %v1363_v54 }
 0x1a6   :  { %v2039_v6 = vpop.eup %2038  ;;  %2058 = vtanh.f32 %v2631_v0  ;;  %1540 = vst [vmem:[%s2768_s4 + $0x78] sm:$0xff] %v1476_v2  ;;  %v1399_v44 = vmul.f32 0.5, %v1383_v57  ;;  %v1384_v62 = vadd.f32 1.0, %v2037_v61 }
 0x1a7   :  { %v2041_v10 = vpop.eup %2040  ;;  %v1493_v11 = vmul.f32 %v2646_v30, %v1397_v63  ;;  %v1398_v12 = vmul.f32 0.5, %v1382_v5  ;;  %v1385_v4 = vadd.f32 1.0, %v2039_v6  ;;  %2060 = vtanh.f32 %v1362_v60 }
 0x1a8   :  { %v2043_v17 = vpop.eup %2042  ;;  %v1495_v3 = vmul.f32 %v2653_v27, %v1399_v44  ;;  %v1400_v59 = vmul.f32 0.5, %v1384_v62  ;;  %v1387_v22 = vadd.f32 1.0, %v2041_v10  ;;  %2062 = vtanh.f32 %v1364_v39 }
 0x1a9   :  { %v2045_v18 = vpop.eup %2044  ;;  %2064 = vtanh.f32 %v2637_v15  ;;  %1509 = vst [vmem:[%s2769_s3] sm:$0xff] %v1493_v11  ;;  %v1494_v19 = vmul.f32 %v2660_v37, %v1398_v12  ;;  %v1401_v26 = vmul.f32 0.5, %v1385_v4  ;;  %v1386_v25 = vadd.f32 1.0, %v2043_v17 }
 0x1aa   :  { %v2047_v0 = vpop.eup %2046  ;;  %1511 = vst [vmem:[%s2769_s3 + $0x10] sm:$0xff] %v1495_v3  ;;  %v1496_v28 = vmul.f32 %v2664_v21, %v1400_v59  ;;  %v1403_v14 = vmul.f32 0.5, %v1387_v22  ;;  %v1388_v30 = vadd.f32 1.0, %v2045_v18  ;;  %2066 = vtanh.f32 %v2643_v29 }
 0x1ab   :  { %v2049_v23 = vpop.eup %2048  ;;  %1510 = vst [vmem:[%s2769_s3 + $0x8] sm:$0xff] %v1494_v19  ;;  %v1497_v15 = vmul.f32 %v2667_v41, %v1401_v26  ;;  %v1402_v27 = vmul.f32 0.5, %v1386_v25  ;;  %v1389_v7 = vadd.f32 1.0, %v2047_v0  ;;  %2068 = vtanh.f32 %v1476_v2 }
 0x1ac   :  { %v2051_v37 = vpop.eup %2050  ;;  %1512 = vst [vmem:[%s2769_s3 + $0x18] sm:$0xff] %v1496_v28  ;;  %v1499_v40 = vmul.f32 %v2670_v46, %v1403_v14  ;;  %v1404_v21 = vmul.f32 0.5, %v1388_v30  ;;  %v1391_v8 = vadd.f32 1.0, %v2049_v23 }
 0x1ad   :  { %v2053_v45 = vpop.eup %2052  ;;  %1513 = vst [vmem:[%s2769_s3 + $0x20] sm:$0xff] %v1497_v15  ;;  %v1498_v29 = vmul.f32 %v2674_v42, %v1402_v27  ;;  %v1405_v41 = vmul.f32 0.5, %v1389_v7  ;;  %v1390_v13 = vadd.f32 1.0, %v2051_v37 }
 0x1ae   :  { %v2055_v32 = vpop.eup %2054  ;;  %1515 = vst [vmem:[%s2769_s3 + $0x30] sm:$0xff] %v1499_v40  ;;  %v1500_v16 = vmul.f32 %v2677_v47, %v1404_v21  ;;  %v1407_v20 = vmul.f32 0.5, %v1391_v8  ;;  %v1392_v46 = vadd.f32 1.0, %v2053_v45 }
 0x1af   :  { %v2057_v48 = vpop.eup %2056  ;;  %1514 = vst [vmem:[%s2769_s3 + $0x28] sm:$0xff] %v1498_v29  ;;  %v1501_v43 = vmul.f32 %v2681_v24, %v1405_v41  ;;  %v1406_v35 = vmul.f32 0.5, %v1390_v13  ;;  %v1393_v42 = vadd.f32 1.0, %v2055_v32 }
 0x1b0   :  { %v2059_v49 = vpop.eup %2058  ;;  %1516 = vst [vmem:[%s2769_s3 + $0x38] sm:$0xff] %v1500_v16  ;;  %v1503_v9 = vmul.f32 %v2684_v31, %v1407_v20  ;;  %v1408_v36 = vmul.f32 0.5, %v1392_v46  ;;  %v1395_v47 = vadd.f32 1.0, %v2057_v48 }
 0x1b1   :  { %v2061_v52 = vpop.eup %2060  ;;  %1517 = vst [vmem:[%s2769_s3 + $0x40] sm:$0xff] %v1501_v43  ;;  %v1502_v51 = vmul.f32 %v2687_v33, %v1406_v35  ;;  %v1409_v34 = vmul.f32 0.5, %v1393_v42 }
 0x1b2   :  { %v2063_v24 = vpop.eup %2062  ;;  %1519 = vst [vmem:[%s2769_s3 + $0x50] sm:$0xff] %v1503_v9  ;;  %v1504_v54 = vmul.f32 %v2693_v50, %v1408_v36  ;;  %v1411_v53 = vmul.f32 0.5, %v1395_v47  ;;  %v1394_v56 = vadd.f32 1.0, %v2061_v52 }
 0x1b3   :  { %v2065_v31 = vpop.eup %2064  ;;  %1518 = vst [vmem:[%s2769_s3 + $0x48] sm:$0xff] %v1502_v51  ;;  %v1505_v55 = vmul.f32 %v2059_v49, %v1409_v34  ;;  %v1396_v38 = vadd.f32 1.0, %v2063_v24 }
 0x1b4   :  { %1520 = vst [vmem:[%s2769_s3 + $0x58] sm:$0xff] %v1504_v54  ;;  %v1507_v33 = vmul.f32 %v2065_v31, %v1411_v53  ;;  %v1410_v58 = vmul.f32 0.5, %v1394_v56  ;;  %v2067_v60 = vpop.eup %2066 }
 0x1b5   :  { %1521 = vst [vmem:[%s2769_s3 + $0x60] sm:$0xff] %v1505_v55  ;;  %v1412_v50 = vmul.f32 0.5, %v1396_v38  ;;  %v2069_v1 = vpop.eup %2068 }
 0x1b6   :  { %1523 = vst [vmem:[%s2769_s3 + $0x70] sm:$0xff] %v1507_v33  ;;  %v1506_v2 = vmul.f32 %v2067_v60, %v1410_v58 }
 0x1b7   :  { %v1508_v57 = vmul.f32 %v2069_v1, %v1412_v50 }
 0x1b8   :  { %1522 = vst [vmem:[%s2769_s3 + $0x68] sm:$0xff] %v1506_v2 }
 0x1b9   :  { %1524 = vst [vmem:[%s2769_s3 + $0x78] sm:$0xff] %v1508_v57 }

</bundles_post_ra>
